<compile_context>
chip_gen: v5e
topology: v5e:2x2
jax: 0.10.0
libtpu: 0.0.40
codegen_flags: <defaults>
</compile_context>

<pallas_src>
import functools

import jax
import jax.numpy as jnp
from jax.experimental import pallas as pl
from jax.experimental.pallas import tpu as pltpu

DILATIONS = (1, 2, 3, 4)
KS = 3           # temporal kernel size for dilation branches (odd)
EPS = 1e-5

PACKED_NAMES = ('wpw', 'spw', 'wt', 'sdil', 's4b', 't4b')


# ----------------------------------------------------------------------------
# Pallas kernel: one block of Nb batch elements per grid step, fully fused.
# Layout inside the kernel: rows = channels, lanes = (local batch, T, V).
# ----------------------------------------------------------------------------
def _mstcn_kernel(dilations, ks, T, V, BC,
                  x_ref, lane_ref,
                  wpw_ref, spw_ref, wt_ref, sdil_ref, s4b_ref, t4b_ref,
                  o_ref):
    nbr = len(dilations)
    tv = T * V
    x = x_ref[0]                                  # (Cin, M), M = Nb*T*V
    M = x.shape[-1]
    lane = lane_ref[...]                          # (1, M) int32: (t*V + v) per example

    # --- ONE fused matmul for all 7 pointwise (1x1) convs; bias+BN pre-folded.
    z = jnp.dot(wpw_ref[...], x, preferred_element_type=jnp.float32)
    z = z + spw_ref[...]                          # (6*BC + Cout, M), f32

    y_dil = jnp.maximum(z[:nbr * BC], 0.0)        # dilation branches, post-ReLU
    y_mp = jnp.maximum(z[nbr * BC:(nbr + 1) * BC], 0.0)
    plain = z[(nbr + 1) * BC:(nbr + 2) * BC]      # already final (BN folded)
    res = z[(nbr + 2) * BC:]                      # residual, already final

    # --- fused dilated temporal convs: build im2col rows with XLU rolls +
    #     boundary masks, then ONE block-structured matmul (all branches/taps).
    pieces = []
    for k in range(ks):
        off = k - (ks - 1) // 2                   # tap reads time t + off*d
        if off == 0:
            pieces.append(y_dil)
            continue
        for i, d in enumerate(dilations):
            yi = y_dil[i * BC:(i + 1) * BC]
            sh = off * d * V                      # lane shift for this (tap, branch)
            if sh > 0:                            # reads t + |off|*d
                p_ = pltpu.roll(yi, (-sh) % M, 1)     # p_[:, m] = yi[:, m + sh]
                pieces.append(jnp.where(lane < tv - sh, p_, 0.0))
            else:                                 # reads t - |off|*d
                p_ = pltpu.roll(yi, -sh, 1)           # p_[:, m] = yi[:, m + sh]
                pieces.append(jnp.where(lane >= -sh, p_, 0.0))
    ycat = jnp.concatenate(pieces, axis=0)        # (ks*nbr*BC, M)

    dil = jnp.dot(wt_ref[...], ycat.astype(wt_ref.dtype),
                  preferred_element_type=jnp.float32) + sdil_ref[...]

    # --- maxpool branch: MaxPool2d((3,1), stride 1, pad (1,0)) + BN,
    #     via rolls + boundary masks (keeps -inf padding semantics).
    up = jnp.where(lane < tv - V, pltpu.roll(y_mp, (-V) % M, 1), -jnp.inf)
    dn = jnp.where(lane >= V, pltpu.roll(y_mp, V, 1), -jnp.inf)
    mp = jnp.maximum(jnp.maximum(y_mp, up), dn) * s4b_ref[...] + t4b_ref[...]

    # --- assemble in branch-concat order + residual; single lane-dense store.
    out = jnp.concatenate([dil, mp, plain], axis=0) + res     # (Cout, M)
    o_ref[0] = out.astype(o_ref.dtype)


# ----------------------------------------------------------------------------
# Parameter packing: fold conv bias + inference BN into weights, build the
# single pointwise weight and the block-structured temporal weight.
# ----------------------------------------------------------------------------
def pack_params(p, Cout, dilations=DILATIONS, ks=KS, matmul_dtype=jnp.float32):
    nbr = len(dilations)
    BC = Cout // (nbr + 2)

    cols, shifts = [], []
    for i in range(nbr):
        cols.append(p['w1'][i] * p['s1'][i][None, :])
        shifts.append(p['b1'][i] * p['s1'][i] + p['t1'][i])
    cols.append(p['w4'] * p['s4a'][None, :]); shifts.append(p['b4'] * p['s4a'] + p['t4a'])
    cols.append(p['w5'] * p['s5'][None, :]);  shifts.append(p['b5'] * p['s5'] + p['t5'])
    cols.append(p['wr'] * p['sr'][None, :]);  shifts.append(p['br'] * p['sr'] + p['tr'])
    wpw = jnp.concatenate(cols, axis=1).T.astype(matmul_dtype)      # (6*BC+Cout, Cin)
    spw = jnp.concatenate(shifts)[:, None].astype(jnp.float32)      # (6*BC+Cout, 1)

    # block-structured temporal weight: rows = branch-major output channels,
    # cols = [tap 0 | tap 1 | ... ] x branch-major input channels.
    wt_all = jnp.zeros((nbr * BC, ks * nbr * BC), jnp.float32)
    for i in range(nbr):
        for k in range(ks):
            blk = (p['wt'][i, k] * p['s2'][i][None, :]).T           # (BC_out, BC_in)
            c0 = k * nbr * BC + i * BC
            wt_all = wt_all.at[i * BC:(i + 1) * BC, c0:c0 + BC].set(blk)
    sdil = (p['bt'] * p['s2'] + p['t2']).reshape(nbr * BC)[:, None]

    return {'wpw': wpw,
            'spw': spw,
            'wt': wt_all.astype(matmul_dtype),
            'sdil': sdil.astype(jnp.float32),
            's4b': p['s4b'][:, None].astype(jnp.float32),
            't4b': p['t4b'][:, None].astype(jnp.float32)}


def _choose_block_batch(N, T, V, Cin, Cout,
                        target_lanes=1024, vmem_budget_bytes=6 * 1024 * 1024):
    """Batch elements per grid step: big enough to amortize per-step overhead,
    small enough to stay well inside scoped VMEM (v7x: 64 MiB physical /
    32 MiB default scope; v5e default scope 16 MiB), and leaving >= 2 grid
    steps so v7x's two TensorCores both get work."""
    tv = T * V
    bc = max(1, Cout // 6)
    bytes_per_lane = 4 * (3 * Cin + 7 * Cout + 16 * bc + 64)   # rough f32 working set
    max_lanes = max(tv, vmem_budget_bytes // bytes_per_lane)
    nb = max(1, min(target_lanes, max_lanes) // tv)
    nb = min(nb, N)
    if N >= 2:
        nb = min(nb, N // 2)
    nb = max(nb, 1)
    while N % nb:
        nb -= 1
    return nb


# ----------------------------------------------------------------------------
# Wrapper: NCHW in, NCHW out.
# ----------------------------------------------------------------------------
def multiscale_temporal_conv(x_nchw, params, dilations=DILATIONS, ks=KS,
                             matmul_dtype=jnp.float32, block_batch=None):
    assert ks % 2 == 1, "odd temporal kernel size assumed (matches module pad)"
    N, Cin, T, V = x_nchw.shape
    nbr = len(dilations)
    Cout = params['wr'].shape[1]
    BC = Cout // (nbr + 2)

    nb = block_batch if block_batch is not None else _choose_block_batch(N, T, V, Cin, Cout)
    assert N % nb == 0
    nblk = N // nb
    M = nb * T * V

    packed = pack_params(params, Cout, dilations, ks, matmul_dtype)
    lane = (jnp.arange(M, dtype=jnp.int32) % (T * V)).reshape(1, M)
    plist = [lane] + [packed[k] for k in PACKED_NAMES]

    # channels-on-sublane / (batch*T*V)-on-lane layout: NCHW is already
    # channels-first, so this is pure layout plumbing in the wrapper.
    x = x_nchw.astype(matmul_dtype).reshape(nblk, nb, Cin, T * V)
    x = jnp.transpose(x, (0, 2, 1, 3)).reshape(nblk, Cin, M)

    kernel = functools.partial(_mstcn_kernel, dilations, ks, T, V, BC)
    out = pl.pallas_call(
        kernel,
        out_shape=jax.ShapeDtypeStruct((nblk, Cout, M), jnp.float32),
        grid=(nblk,),
        in_specs=[pl.BlockSpec((1, Cin, M), lambda n: (n, 0, 0))]
                 + [pl.BlockSpec(q.shape, lambda n, _nd=q.ndim: (0,) * _nd)
                    for q in plist],
        out_specs=pl.BlockSpec((1, Cout, M), lambda n: (n, 0, 0)),
        compiler_params=pltpu.CompilerParams(dimension_semantics=("parallel",)),
    )(x, *plist)

    out = out.reshape(nblk, Cout, nb, T, V)
    out = jnp.transpose(out, (0, 2, 1, 3, 4)).reshape(N, Cout, T, V)
    return out


# ----------------------------------------------------------------------------
# Deterministic parameter init (shapes match the PyTorch module __init__).
# BN params are folded into scale/shift (inference-mode BN).
# ----------------------------------------------------------------------------
def init_params(key, Cin, Cout, dilations=DILATIONS, ks=KS):
    nbranch = len(dilations) + 2
    assert Cout % nbranch == 0
    BC = Cout // nbranch
    keys = list(jax.random.split(key, 128))
    it = iter(keys)

    def conv_w(shape, fan_out):
        return jax.random.normal(next(it), shape, jnp.float32) * jnp.sqrt(2.0 / fan_out)

    def conv_b(c):
        return 0.01 * jax.random.normal(next(it), (c,), jnp.float32)

    def bn(c):
        gamma = 1.0 + 0.02 * jax.random.normal(next(it), (c,), jnp.float32)
        beta = 0.05 * jax.random.normal(next(it), (c,), jnp.float32)
        mean = 0.1 * jax.random.normal(next(it), (c,), jnp.float32)
        var = jax.random.uniform(next(it), (c,), jnp.float32, minval=0.5, maxval=1.5)
        scale = gamma / jnp.sqrt(var + EPS)
        shift = beta - mean * scale
        return scale, shift

    w1, b1, s1, t1, wt, bt, s2, t2 = ([] for _ in range(8))
    for _ in dilations:
        w1.append(conv_w((Cin, BC), BC));          b1.append(conv_b(BC))
        s, t = bn(BC); s1.append(s); t1.append(t)
        wt.append(conv_w((ks, BC, BC), BC * ks));  bt.append(conv_b(BC))
        s, t = bn(BC); s2.append(s); t2.append(t)

    p = {
        'w1': jnp.stack(w1), 'b1': jnp.stack(b1), 's1': jnp.stack(s1), 't1': jnp.stack(t1),
        'wt': jnp.stack(wt), 'bt': jnp.stack(bt), 's2': jnp.stack(s2), 't2': jnp.stack(t2),
    }
    p['w4'] = conv_w((Cin, BC), BC); p['b4'] = conv_b(BC)
    p['s4a'], p['t4a'] = bn(BC)
    p['s4b'], p['t4b'] = bn(BC)
    p['w5'] = conv_w((Cin, BC), BC); p['b5'] = conv_b(BC)
    p['s5'], p['t5'] = bn(BC)
    # residual TemporalConv(Cin, Cout, kernel_size=1, stride=1) = 1x1 conv + BN
    p['wr'] = conv_w((Cin, Cout), Cout); p['br'] = conv_b(Cout)
    p['sr'], p['tr'] = bn(Cout)
    return p


# ----------------------------------------------------------------------------
# Pure-JAX reference (same math, batched) for correctness checking.
# ----------------------------------------------------------------------------
def reference_forward(x_nchw, p, dilations=DILATIONS, ks=KS):
    x = jnp.transpose(x_nchw, (0, 2, 3, 1)).astype(jnp.float32)
    N, T, V, _ = x.shape
    outs = []
    for i, d in enumerate(dilations):
        y = jnp.einsum('ntvc,cd->ntvd', x, p['w1'][i]) + p['b1'][i]
        y = jax.nn.relu(y * p['s1'][i] + p['t1'][i])
        pad = (ks + (ks - 1) * (d - 1) - 1) // 2
        ypad = jnp.pad(y, ((0, 0), (pad, pad), (0, 0), (0, 0)))
        acc = jnp.zeros_like(y) + p['bt'][i]
        for k in range(ks):
            acc = acc + jnp.einsum('ntvc,cd->ntvd', ypad[:, k * d:k * d + T], p['wt'][i, k])
        outs.append(acc * p['s2'][i] + p['t2'][i])
    y = jax.nn.relu((jnp.einsum('ntvc,cd->ntvd', x, p['w4']) + p['b4']) * p['s4a'] + p['t4a'])
    ypad = jnp.pad(y, ((0, 0), (1, 1), (0, 0), (0, 0)), constant_values=-jnp.inf)
    m = jnp.maximum(jnp.maximum(ypad[:, 0:T], ypad[:, 1:T + 1]), ypad[:, 2:T + 2])
    outs.append(m * p['s4b'] + p['t4b'])
    outs.append((jnp.einsum('ntvc,cd->ntvd', x, p['w5']) + p['b5']) * p['s5'] + p['t5'])
    res = (jnp.einsum('ntvc,cd->ntvd', x, p['wr']) + p['br']) * p['sr'] + p['tr']
    out = jnp.concatenate(outs, axis=-1) + res
    return jnp.transpose(out, (0, 3, 1, 2))


if __name__ == "__main__":
    # small shapes: N=2, C_in=8, T=16, V=8, C_out=12 (6 branches x 2 channels)
    N, Cin, T, V = 2, 8, 16, 8
    Cout = 12

    key = jax.random.PRNGKey(0)
    kx, kp = jax.random.split(key)
    x = jax.random.normal(kx, (N, Cin, T, V), jnp.float32)   # PyTorch NCHW = (N, C, T, V)
    params = init_params(kp, Cin, Cout)

    fwd = jax.jit(multiscale_temporal_conv)
    out = jax.block_until_ready(fwd(x, params))

    ref = reference_forward(x, params)
    max_err = float(jnp.max(jnp.abs(out - ref)))
    assert out.shape == (N, Cout, T, V), out.shape
    assert max_err < 1e-2, f"mismatch vs reference: {max_err}"

    print("KERNEL_OK")
</pallas_src>

<mosaic_0001>
module attributes {stable_mosaic.version = 11 : i64} {
  func.func @_mstcn_kernel(%arg0: i32, %arg1: memref<1x8x128xf32, #tpu.memory_space<vmem>>, %arg2: memref<1x128xi32, #tpu.memory_space<vmem>>, %arg3: memref<24x8xf32, #tpu.memory_space<vmem>>, %arg4: memref<24x1xf32, #tpu.memory_space<vmem>>, %arg5: memref<8x24xf32, #tpu.memory_space<vmem>>, %arg6: memref<8x1xf32, #tpu.memory_space<vmem>>, %arg7: memref<2x1xf32, #tpu.memory_space<vmem>>, %arg8: memref<2x1xf32, #tpu.memory_space<vmem>>, %arg9: memref<1x12x128xf32, #tpu.memory_space<vmem>>) attributes {dimension_semantics = [#tpu.dimension_semantics<parallel>], iteration_bounds = array<i64: 2>, scalar_prefetch = 0 : i64, scratch_operands = 0 : i64, tpu.core_type = #tpu.core_type<tc>, window_params = [{transform_indices = @transform_0, window_bounds = array<i64: 1, 8, 128>}, {pipeline_mode = #tpu.pipeline_mode<synchronous>, transform_indices = @transform_1, window_bounds = array<i64: 1, 128>}, {pipeline_mode = #tpu.pipeline_mode<synchronous>, transform_indices = @transform_2, window_bounds = array<i64: 24, 8>}, {pipeline_mode = #tpu.pipeline_mode<synchronous>, transform_indices = @transform_3, window_bounds = array<i64: 24, 1>}, {pipeline_mode = #tpu.pipeline_mode<synchronous>, transform_indices = @transform_4, window_bounds = array<i64: 8, 24>}, {pipeline_mode = #tpu.pipeline_mode<synchronous>, transform_indices = @transform_5, window_bounds = array<i64: 8, 1>}, {pipeline_mode = #tpu.pipeline_mode<synchronous>, transform_indices = @transform_6, window_bounds = array<i64: 2, 1>}, {pipeline_mode = #tpu.pipeline_mode<synchronous>, transform_indices = @transform_7, window_bounds = array<i64: 2, 1>}, {transform_indices = @transform_8, window_bounds = array<i64: 1, 12, 128>}]} {
    %c0 = arith.constant 0 : index
    %c0_0 = arith.constant 0 : index
    %c0_1 = arith.constant 0 : index
    %0 = vector.load %arg1[%c0, %c0_0, %c0_1] : memref<1x8x128xf32, #tpu.memory_space<vmem>>, vector<1x8x128xf32>
    %1 = vector.shape_cast %0 : vector<1x8x128xf32> to vector<8x128xf32>
    %c0_2 = arith.constant 0 : index
    %c0_3 = arith.constant 0 : index
    %2 = vector.load %arg2[%c0_2, %c0_3] : memref<1x128xi32, #tpu.memory_space<vmem>>, vector<1x128xi32>
    %c0_4 = arith.constant 0 : index
    %c0_5 = arith.constant 0 : index
    %3 = vector.load %arg3[%c0_4, %c0_5] : memref<24x8xf32, #tpu.memory_space<vmem>>, vector<24x8xf32>
    %cst = arith.constant dense<0.000000e+00> : vector<24x128xf32>
    %4 = tpu.matmul %3, %1, %cst {dimension_numbers = #tpu.dot_dimension_numbers<[1], [0], [0], [1], [0, 0, 1, 1], [], []>} : vector<24x8xf32>, vector<8x128xf32>, vector<24x128xf32> -> vector<24x128xf32>
    %c0_6 = arith.constant 0 : index
    %c0_7 = arith.constant 0 : index
    %5 = vector.load %arg4[%c0_6, %c0_7] : memref<24x1xf32, #tpu.memory_space<vmem>>, vector<24x1xf32>
    %6 = vector.broadcast %5 : vector<24x1xf32> to vector<24x128xf32>
    %7 = arith.addf %4, %6 : vector<24x128xf32>
    %8 = vector.extract_strided_slice %7 {offsets = [0, 0], sizes = [8, 128], strides = [1, 1]} : vector<24x128xf32> to vector<8x128xf32>
    %cst_8 = arith.constant 0.000000e+00 : f32
    %9 = vector.broadcast %cst_8 : f32 to vector<8x128xf32>
    %10 = arith.maximumf %8, %9 : vector<8x128xf32>
    %11 = vector.extract_strided_slice %7 {offsets = [8, 0], sizes = [2, 128], strides = [1, 1]} : vector<24x128xf32> to vector<2x128xf32>
    %cst_9 = arith.constant 0.000000e+00 : f32
    %12 = vector.broadcast %cst_9 : f32 to vector<2x128xf32>
    %13 = arith.maximumf %11, %12 : vector<2x128xf32>
    %14 = vector.extract_strided_slice %7 {offsets = [10, 0], sizes = [2, 128], strides = [1, 1]} : vector<24x128xf32> to vector<2x128xf32>
    %15 = vector.extract_strided_slice %7 {offsets = [12, 0], sizes = [12, 128], strides = [1, 1]} : vector<24x128xf32> to vector<12x128xf32>
    %16 = vector.extract_strided_slice %10 {offsets = [0, 0], sizes = [2, 128], strides = [1, 1]} : vector<8x128xf32> to vector<2x128xf32>
    %c8_i32 = arith.constant 8 : i32
    %17 = tpu.dynamic_rotate %16 by %c8_i32 dim 1 : vector<2x128xf32>, i32 -> vector<2x128xf32>
    %c8_i32_10 = arith.constant 8 : i32
    %18 = vector.broadcast %c8_i32_10 : i32 to vector<1x128xi32>
    %19 = arith.cmpi sge, %2, %18 : vector<1x128xi32>
    %cst_11 = arith.constant 0.000000e+00 : f32
    %20 = vector.shape_cast %19 : vector<1x128xi1> to vector<1x128xi1>
    %21 = vector.broadcast %20 : vector<1x128xi1> to vector<2x128xi1>
    %22 = vector.broadcast %cst_11 : f32 to vector<2x128xf32>
    %23 = arith.select %21, %17, %22 : vector<2x128xi1>, vector<2x128xf32>
    %24 = vector.extract_strided_slice %10 {offsets = [2, 0], sizes = [2, 128], strides = [1, 1]} : vector<8x128xf32> to vector<2x128xf32>
    %c16_i32 = arith.constant 16 : i32
    %25 = tpu.dynamic_rotate %24 by %c16_i32 dim 1 : vector<2x128xf32>, i32 -> vector<2x128xf32>
    %c16_i32_12 = arith.constant 16 : i32
    %26 = vector.broadcast %c16_i32_12 : i32 to vector<1x128xi32>
    %27 = arith.cmpi sge, %2, %26 : vector<1x128xi32>
    %cst_13 = arith.constant 0.000000e+00 : f32
    %28 = vector.shape_cast %27 : vector<1x128xi1> to vector<1x128xi1>
    %29 = vector.broadcast %28 : vector<1x128xi1> to vector<2x128xi1>
    %30 = vector.broadcast %cst_13 : f32 to vector<2x128xf32>
    %31 = arith.select %29, %25, %30 : vector<2x128xi1>, vector<2x128xf32>
    %32 = vector.extract_strided_slice %10 {offsets = [4, 0], sizes = [2, 128], strides = [1, 1]} : vector<8x128xf32> to vector<2x128xf32>
    %c24_i32 = arith.constant 24 : i32
    %33 = tpu.dynamic_rotate %32 by %c24_i32 dim 1 : vector<2x128xf32>, i32 -> vector<2x128xf32>
    %c24_i32_14 = arith.constant 24 : i32
    %34 = vector.broadcast %c24_i32_14 : i32 to vector<1x128xi32>
    %35 = arith.cmpi sge, %2, %34 : vector<1x128xi32>
    %cst_15 = arith.constant 0.000000e+00 : f32
    %36 = vector.shape_cast %35 : vector<1x128xi1> to vector<1x128xi1>
    %37 = vector.broadcast %36 : vector<1x128xi1> to vector<2x128xi1>
    %38 = vector.broadcast %cst_15 : f32 to vector<2x128xf32>
    %39 = arith.select %37, %33, %38 : vector<2x128xi1>, vector<2x128xf32>
    %40 = vector.extract_strided_slice %10 {offsets = [6, 0], sizes = [2, 128], strides = [1, 1]} : vector<8x128xf32> to vector<2x128xf32>
    %c32_i32 = arith.constant 32 : i32
    %41 = tpu.dynamic_rotate %40 by %c32_i32 dim 1 : vector<2x128xf32>, i32 -> vector<2x128xf32>
    %c32_i32_16 = arith.constant 32 : i32
    %42 = vector.broadcast %c32_i32_16 : i32 to vector<1x128xi32>
    %43 = arith.cmpi sge, %2, %42 : vector<1x128xi32>
    %cst_17 = arith.constant 0.000000e+00 : f32
    %44 = vector.shape_cast %43 : vector<1x128xi1> to vector<1x128xi1>
    %45 = vector.broadcast %44 : vector<1x128xi1> to vector<2x128xi1>
    %46 = vector.broadcast %cst_17 : f32 to vector<2x128xf32>
    %47 = arith.select %45, %41, %46 : vector<2x128xi1>, vector<2x128xf32>
    %48 = vector.extract_strided_slice %10 {offsets = [0, 0], sizes = [2, 128], strides = [1, 1]} : vector<8x128xf32> to vector<2x128xf32>
    %c120_i32 = arith.constant 120 : i32
    %49 = tpu.dynamic_rotate %48 by %c120_i32 dim 1 : vector<2x128xf32>, i32 -> vector<2x128xf32>
    %c120_i32_18 = arith.constant 120 : i32
    %50 = vector.broadcast %c120_i32_18 : i32 to vector<1x128xi32>
    %51 = arith.cmpi slt, %2, %50 : vector<1x128xi32>
    %cst_19 = arith.constant 0.000000e+00 : f32
    %52 = vector.shape_cast %51 : vector<1x128xi1> to vector<1x128xi1>
    %53 = vector.broadcast %52 : vector<1x128xi1> to vector<2x128xi1>
    %54 = vector.broadcast %cst_19 : f32 to vector<2x128xf32>
    %55 = arith.select %53, %49, %54 : vector<2x128xi1>, vector<2x128xf32>
    %56 = vector.extract_strided_slice %10 {offsets = [2, 0], sizes = [2, 128], strides = [1, 1]} : vector<8x128xf32> to vector<2x128xf32>
    %c112_i32 = arith.constant 112 : i32
    %57 = tpu.dynamic_rotate %56 by %c112_i32 dim 1 : vector<2x128xf32>, i32 -> vector<2x128xf32>
    %c112_i32_20 = arith.constant 112 : i32
    %58 = vector.broadcast %c112_i32_20 : i32 to vector<1x128xi32>
    %59 = arith.cmpi slt, %2, %58 : vector<1x128xi32>
    %cst_21 = arith.constant 0.000000e+00 : f32
    %60 = vector.shape_cast %59 : vector<1x128xi1> to vector<1x128xi1>
    %61 = vector.broadcast %60 : vector<1x128xi1> to vector<2x128xi1>
    %62 = vector.broadcast %cst_21 : f32 to vector<2x128xf32>
    %63 = arith.select %61, %57, %62 : vector<2x128xi1>, vector<2x128xf32>
    %64 = vector.extract_strided_slice %10 {offsets = [4, 0], sizes = [2, 128], strides = [1, 1]} : vector<8x128xf32> to vector<2x128xf32>
    %c104_i32 = arith.constant 104 : i32
    %65 = tpu.dynamic_rotate %64 by %c104_i32 dim 1 : vector<2x128xf32>, i32 -> vector<2x128xf32>
    %c104_i32_22 = arith.constant 104 : i32
    %66 = vector.broadcast %c104_i32_22 : i32 to vector<1x128xi32>
    %67 = arith.cmpi slt, %2, %66 : vector<1x128xi32>
    %cst_23 = arith.constant 0.000000e+00 : f32
    %68 = vector.shape_cast %67 : vector<1x128xi1> to vector<1x128xi1>
    %69 = vector.broadcast %68 : vector<1x128xi1> to vector<2x128xi1>
    %70 = vector.broadcast %cst_23 : f32 to vector<2x128xf32>
    %71 = arith.select %69, %65, %70 : vector<2x128xi1>, vector<2x128xf32>
    %72 = vector.extract_strided_slice %10 {offsets = [6, 0], sizes = [2, 128], strides = [1, 1]} : vector<8x128xf32> to vector<2x128xf32>
    %c96_i32 = arith.constant 96 : i32
    %73 = tpu.dynamic_rotate %72 by %c96_i32 dim 1 : vector<2x128xf32>, i32 -> vector<2x128xf32>
    %c96_i32_24 = arith.constant 96 : i32
    %74 = vector.broadcast %c96_i32_24 : i32 to vector<1x128xi32>
    %75 = arith.cmpi slt, %2, %74 : vector<1x128xi32>
    %cst_25 = arith.constant 0.000000e+00 : f32
    %76 = vector.shape_cast %75 : vector<1x128xi1> to vector<1x128xi1>
    %77 = vector.broadcast %76 : vector<1x128xi1> to vector<2x128xi1>
    %78 = vector.broadcast %cst_25 : f32 to vector<2x128xf32>
    %79 = arith.select %77, %73, %78 : vector<2x128xi1>, vector<2x128xf32>
    %80 = tpu.concatenate %23, %31, %39, %47, %10, %55, %63, %71, %79 in 0 : vector<2x128xf32>, vector<2x128xf32>, vector<2x128xf32>, vector<2x128xf32>, vector<8x128xf32>, vector<2x128xf32>, vector<2x128xf32>, vector<2x128xf32>, vector<2x128xf32> -> vector<24x128xf32>
    %c0_26 = arith.constant 0 : index
    %c0_27 = arith.constant 0 : index
    %81 = vector.load %arg5[%c0_26, %c0_27] : memref<8x24xf32, #tpu.memory_space<vmem>>, vector<8x24xf32>
    %cst_28 = arith.constant dense<0.000000e+00> : vector<8x128xf32>
    %82 = tpu.matmul %81, %80, %cst_28 {dimension_numbers = #tpu.dot_dimension_numbers<[1], [0], [0], [1], [0, 0, 1, 1], [], []>} : vector<8x24xf32>, vector<24x128xf32>, vector<8x128xf32> -> vector<8x128xf32>
    %c0_29 = arith.constant 0 : index
    %c0_30 = arith.constant 0 : index
    %83 = vector.load %arg6[%c0_29, %c0_30] : memref<8x1xf32, #tpu.memory_space<vmem>>, vector<8x1xf32>
    %84 = vector.broadcast %83 : vector<8x1xf32> to vector<8x128xf32>
    %85 = arith.addf %82, %84 : vector<8x128xf32>
    %c120_i32_31 = arith.constant 120 : i32
    %86 = vector.broadcast %c120_i32_31 : i32 to vector<1x128xi32>
    %87 = arith.cmpi slt, %2, %86 : vector<1x128xi32>
    %c120_i32_32 = arith.constant 120 : i32
    %88 = tpu.dynamic_rotate %13 by %c120_i32_32 dim 1 : vector<2x128xf32>, i32 -> vector<2x128xf32>
    %cst_33 = arith.constant 0xFF800000 : f32
    %89 = vector.shape_cast %87 : vector<1x128xi1> to vector<1x128xi1>
    %90 = vector.broadcast %89 : vector<1x128xi1> to vector<2x128xi1>
    %91 = vector.broadcast %cst_33 : f32 to vector<2x128xf32>
    %92 = arith.select %90, %88, %91 : vector<2x128xi1>, vector<2x128xf32>
    %c8_i32_34 = arith.constant 8 : i32
    %93 = vector.broadcast %c8_i32_34 : i32 to vector<1x128xi32>
    %94 = arith.cmpi sge, %2, %93 : vector<1x128xi32>
    %c8_i32_35 = arith.constant 8 : i32
    %95 = tpu.dynamic_rotate %13 by %c8_i32_35 dim 1 : vector<2x128xf32>, i32 -> vector<2x128xf32>
    %cst_36 = arith.constant 0xFF800000 : f32
    %96 = vector.shape_cast %94 : vector<1x128xi1> to vector<1x128xi1>
    %97 = vector.broadcast %96 : vector<1x128xi1> to vector<2x128xi1>
    %98 = vector.broadcast %cst_36 : f32 to vector<2x128xf32>
    %99 = arith.select %97, %95, %98 : vector<2x128xi1>, vector<2x128xf32>
    %100 = arith.maximumf %13, %92 : vector<2x128xf32>
    %101 = arith.maximumf %100, %99 : vector<2x128xf32>
    %c0_37 = arith.constant 0 : index
    %c0_38 = arith.constant 0 : index
    %102 = vector.load %arg7[%c0_37, %c0_38] : memref<2x1xf32, #tpu.memory_space<vmem>>, vector<2x1xf32>
    %103 = vector.broadcast %102 : vector<2x1xf32> to vector<2x128xf32>
    %104 = arith.mulf %101, %103 : vector<2x128xf32>
    %c0_39 = arith.constant 0 : index
    %c0_40 = arith.constant 0 : index
    %105 = vector.load %arg8[%c0_39, %c0_40] : memref<2x1xf32, #tpu.memory_space<vmem>>, vector<2x1xf32>
    %106 = vector.broadcast %105 : vector<2x1xf32> to vector<2x128xf32>
    %107 = arith.addf %104, %106 : vector<2x128xf32>
    %108 = tpu.concatenate %85, %107, %14 in 0 : vector<8x128xf32>, vector<2x128xf32>, vector<2x128xf32> -> vector<12x128xf32>
    %109 = arith.addf %108, %15 : vector<12x128xf32>
    %c0_41 = arith.constant 0 : index
    %c0_42 = arith.constant 0 : index
    %c0_43 = arith.constant 0 : index
    %110 = vector.load %arg9[%c0_41, %c0_42, %c0_43] : memref<1x12x128xf32, #tpu.memory_space<vmem>>, vector<1x12x128xf32>
    %111 = vector.shape_cast %110 : vector<1x12x128xf32> to vector<12x128xf32>
    %112 = vector.shape_cast %109 : vector<12x128xf32> to vector<1x12x128xf32>
    tpu.vector_store %arg9[%c0_41, %c0_42, %c0_43], %112 {strides = array<i32>} : memref<1x12x128xf32, #tpu.memory_space<vmem>>, vector<1x12x128xf32>,
    return
  }
  func.func @transform_0(%arg0: i32) -> (i32, i32, i32) {
    %c0_i32 = arith.constant 0 : i32
    %c0_i32_0 = arith.constant 0 : i32
    %c0_i32_1 = arith.constant 0 : i32
    return %arg0, %c0_i32, %c0_i32_0 : i32, i32, i32
  }
  func.func @transform_1(%arg0: i32) -> (i32, i32) {
    %c0_i32 = arith.constant 0 : i32
    %c0_i32_0 = arith.constant 0 : i32
    %c0_i32_1 = arith.constant 0 : i32
    return %c0_i32, %c0_i32_0 : i32, i32
  }
  func.func @transform_2(%arg0: i32) -> (i32, i32) {
    %c0_i32 = arith.constant 0 : i32
    %c0_i32_0 = arith.constant 0 : i32
    %c0_i32_1 = arith.constant 0 : i32
    return %c0_i32, %c0_i32_0 : i32, i32
  }
  func.func @transform_3(%arg0: i32) -> (i32, i32) {
    %c0_i32 = arith.constant 0 : i32
    %c0_i32_0 = arith.constant 0 : i32
    %c0_i32_1 = arith.constant 0 : i32
    return %c0_i32, %c0_i32_0 : i32, i32
  }
  func.func @transform_4(%arg0: i32) -> (i32, i32) {
    %c0_i32 = arith.constant 0 : i32
    %c0_i32_0 = arith.constant 0 : i32
    %c0_i32_1 = arith.constant 0 : i32
    return %c0_i32, %c0_i32_0 : i32, i32
  }
  func.func @transform_5(%arg0: i32) -> (i32, i32) {
    %c0_i32 = arith.constant 0 : i32
    %c0_i32_0 = arith.constant 0 : i32
    %c0_i32_1 = arith.constant 0 : i32
    return %c0_i32, %c0_i32_0 : i32, i32
  }
  func.func @transform_6(%arg0: i32) -> (i32, i32) {
    %c0_i32 = arith.constant 0 : i32
    %c0_i32_0 = arith.constant 0 : i32
    %c0_i32_1 = arith.constant 0 : i32
    return %c0_i32, %c0_i32_0 : i32, i32
  }
  func.func @transform_7(%arg0: i32) -> (i32, i32) {
    %c0_i32 = arith.constant 0 : i32
    %c0_i32_0 = arith.constant 0 : i32
    %c0_i32_1 = arith.constant 0 : i32
    return %c0_i32, %c0_i32_0 : i32, i32
  }
  func.func @transform_8(%arg0: i32) -> (i32, i32, i32) {
    %c0_i32 = arith.constant 0 : i32
    %c0_i32_0 = arith.constant 0 : i32
    %c0_i32_1 = arith.constant 0 : i32
    return %arg0, %c0_i32, %c0_i32_0 : i32, i32, i32
  }
}

</mosaic_0001>

<bundles_post_ra>
// kernel: multiscale_temporal_conv.1
= control target key start
LH: loop header
LB: loop body
LE: loop exit
PB: predicated region body
PF: predicated region fallthrough
CT: control target
= control target key end

     0   :  { %s673_s27 = smov 0   ;;  %s792_s0 = inlined_call_operand.vmem [shape: f32[2,8,128], index: 0, kind: input, shape index: {}]   ;;  %s793_s1 = inlined_call_operand.vmem [shape: s32[1,128], index: 1, kind: input, shape index: {}]   ;;  %s794_s2 = inlined_call_operand.vmem [shape: f32[24,8], index: 2, kind: input, shape index: {}]   ;;  %s795_s3 = inlined_call_operand.vmem [shape: f32[24,1], index: 3, kind: input, shape index: {}]   ;;  %s796_s4 = inlined_call_operand.vmem [shape: f32[8,24], index: 4, kind: input, shape index: {}]   ;;  %s797_s5 = inlined_call_operand.vmem [shape: f32[8,1], index: 5, kind: input, shape index: {}]   ;;  %s798_s6 = inlined_call_operand.vmem [shape: f32[2,1], index: 6, kind: input, shape index: {}]   ;;  %s799_s7 = inlined_call_operand.vmem [shape: f32[2,1], index: 7, kind: input, shape index: {}]   ;;  %s800_s8 = inlined_call_operand.vmem [shape: f32[2,12,128], index: 8, kind: output, shape index: {}]  }
   0x1 LB: > { %s574_s28 = sadd.s32 4294967295, %s617_s27   ;;  %p578_p0 = scmp.ge.s32.totalorder %s617_s27, 1  ;;  %s617_s27 = sphi %s673_s27, %s18_s27  }
   0x2   : > { %p261_p1 = scmp.lt.s32.totalorder %s617_s27, 3 }
   0x4   : > { %p262_p2 = pnand %p578_p0, %p261_p1 }
   0x5   : > { %p294_p3 = scmp.lt.s32.totalorder (!%p262_p2), %s574_s28, 1  ;;  %s620_s19 = smov (!%p262_p2), 120  }
   0x6   : > { %265 = sbr.rel (%p262_p2) target bundleno = 414 (0x19e), region = 52  ;;  %s621_s20 = smov (!%p262_p2), 96  }
   0x7   : > { %s622_s21 = smov (!%p262_p2), 112   ;;  %s623_s22 = smov (!%p262_p2), 104  }
   0x8   : > { %s624_s23 = smov (!%p262_p2), 16   ;;  %s625_s24 = smov (!%p262_p2), 24  }
   0x9   : > { %s626_s29 = smov (!%p262_p2), 8   ;;  %s627_s30 = smov (!%p262_p2), 32  }
   0xb   : > { %v308_v0 = vld [vmem:[%s795_s3] sm:$0xff]  ;;  %v619_v1 = vmov 0   ;;  %s812_s28 = smov (!%p294_p3, %s574_s28), 1  ;;  %vm326_vm0 = vcmask 64512   ;;  %v306_v4 = vld [vmem:[%s794_s2 + $0x8] sm:$0xff]  ;;  %v307_v5 = vld [vmem:[%s794_s2 + $0x10] sm:$0xff] }
   0xc   : > { %608 = vset.pattern.permute.xlu0 %v619_v1  ;;  %609 = vset.pattern.permute.xlu1 %v619_v1  ;;  %s579_s9 = sshll.u32 %s812_s28, 3  ;;  %v305_v2 = vld [vmem:[%s794_s2] sm:$0xff]  ;;  %v309_v13 = vld [vmem:[%s795_s3 + $0x8] sm:$0xff]  ;;  %v310_v14 = vld [vmem:[%s795_s3 + $0x10] sm:$0xff]  ;;  %vm445_vm13 = vcmask 1041408   ;;  %vm447_vm15 = vcmask 1043456  }
   0xd   : > { %313 = vperm.xlu0 %608, %v308_v0   ;;  %610 = vset.pattern.permute.xlu2 %v619_v1  ;;  %s297_s12 = scalar_lea.vmem %s792_s0, %s579_s9  ;;  %v455_v15 = vld [vmem:[%s797_s5] sm:$0xff] }
   0xe   : > { %v303_v3 = vld [vmem:[%s297_s12] sm:$0xff] }
   0xf   : > { %351 = vmatpush.msra.mxu0 %v303_v3  ;;  %589 = vmatpush.msra.mxu2 %v303_v3  ;;  %v304_v16 = vld [vmem:[%s793_s1] sm:$0x1] }
  0x10   : > { %582 = vmatmul.msk.f32.vlgmr.msra.gmra.mxu0 %vm326_vm0, %v305_v2  ;;  %590 = vmatpush.msra.mxu3 %v303_v3  ;;  %vm408_vm1 = vcmp.lt.s32.totalorder %v304_v16, 112  ;;  %vm422_vm2 = vcmp.lt.s32.totalorder %v304_v16, 96  ;;  %vm415_vm3 = vcmp.lt.s32.totalorder %v304_v16, 104  ;;  %vm401_vm4 = vcmp.lt.s32.totalorder %v304_v16, 120 }
  0x11   : > { %583 = vmatmul.msk.f32.vlgmr.msra.gmra.mxu2 %vm326_vm0, %v306_v4  ;;  %584 = vmatmul.msk.f32.vlgmr.msra.gmra.mxu3 %vm326_vm0, %v307_v5  ;;  %v409_v18 = vsel %vm408_vm1, 1, %v619_v1  ;;  %v423_v20 = vsel %vm422_vm2, 1, %v619_v1  ;;  %vm376_vm5 = vcmp.ge.s32.totalorder %v304_v16, 16  ;;  %v416_v21 = vsel %vm415_vm3, 1, %v619_v1  ;;  %v454_v4 = vld [vmem:[%s796_s4] sm:$0xff] }
  0x12   : > { %v410_v19 = vperm.slane %v409_v18, 0  ;;  %v402_v22 = vsel %vm401_vm4, 1, %v619_v1  ;;  %v424_v24 = vperm.slane %v423_v20, 0  ;;  %vm385_vm7 = vcmp.ge.s32.totalorder %v304_v16, 24 }
  0x13   : > { %v377_v26 = vsel %vm376_vm5, 1, %v619_v1  ;;  %vm394_vm8 = vcmp.ge.s32.totalorder %v304_v16, 32  ;;  %v417_v29 = vperm.slane %v416_v21, 0  ;;  %v403_v30 = vperm.slane %v402_v22, 0 }
  0x14   : > { %vm727_vm6 = vcmp.eq.s32.totalorder %v410_v19, 1  ;;  %v386_v32 = vsel %vm385_vm7, 1, %v619_v1  ;;  %vm366_vm9 = vcmp.ge.s32.totalorder %v304_v16, 8  ;;  %vm735_vm10 = vcmp.eq.s32.totalorder %v424_v24, 1 }
  0x15   : > { %v378_v34 = vperm.slane %v377_v26, 0  ;;  %v395_v35 = vsel %vm394_vm8, 1, %v619_v1  ;;  %vm418_vm11 = vcmp.eq.s32.totalorder %v417_v29, 1  ;;  %vm740_vm12 = vcmp.eq.s32.totalorder %v403_v30, 1 }
  0x16   : > { %v387_v38 = vperm.slane %v386_v32, 0  ;;  %v367_v39 = vsel %vm366_vm9, 1, %v619_v1  ;;  %v396_v41 = vperm.slane %v395_v35, 0  ;;  %vm449_vm0 = vcmask 1045504  }
  0x17   : > { %vm747_vm14 = vcmp.eq.s32.totalorder %v378_v34, 1  ;;  %v368_v48 = vperm.slane %v367_v39, 0  ;;  %vm461_vm4 = vcmask 195584  }
  0x18   : > { %vm388_vm1 = vcmp.eq.s32.totalorder %v387_v38, 1  ;;  %vm397_vm2 = vcmp.eq.s32.totalorder %v396_v41, 1 }
  0x19   : > { %vm758_vm3 = vcmp.eq.s32.totalorder %v368_v48, 1 }
  0x7f   : > { %v314_v6 = vpop.permute.xlu0 %313 }
  0x8d   : > { %v353_v7 = vpop.f32.mrf.mxu0 }
  0x8e   : > { %v354_v8 = vadd.f32 %v353_v7, %v314_v6  ;;  %v493_v7 = vld [vmem:[%s798_s6] sm:$0x3] }
  0x90   : > { %v702_v9 = vmax.f32 %v354_v8, 0.0  ;;  %v500_v8 = vld [vmem:[%s799_s7] sm:$0x3] }
  0x92   : > { %399 = vrot.lane.b32.xlu1 %v702_v9, %s620_s19  ;;  %v390_v10 = vrot.slane %v702_v9, 6  ;;  %v372_v11 = vrot.slane %v702_v9, 2  ;;  %v381_v12 = vrot.slane %v702_v9, 4 }
  0x94   : > { %420 = vrot.lane.b32.xlu2 %v390_v10, %s621_s20  ;;  %406 = vrot.lane.b32.xlu0 %v372_v11, %s622_s21  ;;  %v356_v60 = vpop.f32.mrf.mxu2 }
  0x9a   : > { %413 = vrot.lane.b32.xlu1 %v381_v12, %s623_s22 }
  0x9c   : > { %374 = vrot.lane.b32.xlu2 %v372_v11, %s624_s23  ;;  %383 = vrot.lane.b32.xlu0 %v381_v12, %s625_s24  ;;  %v359_v12 = vpop.f32.mrf.mxu3 }
  0xa2   : > { %364 = vrot.lane.b32.xlu1 %v702_v9, %s626_s29 }
  0xa4   : > { %392 = vrot.lane.b32.xlu2 %v390_v10, %s627_s30  ;;  %318 = vperm.xlu0 %608, %v309_v13  }
  0xac   : > { %323 = vperm.xlu0 %608, %v310_v14  }
  0xb4   : > { %458 = vperm.xlu0 %608, %v455_v15  }
  0xee   : > { %v421_v17 = vpop.permute.xlu2 %420 }
  0xef   : > { %v426_v40 = vsel %vm735_vm10, %v421_v17, 0.0 }
  0xf0   : > { %v443_v49 = vrot.slane %v426_v40, 2 }
  0xf6   : > { %v375_v27 = vpop.permute.xlu2 %374 }
  0xf7   : > { %v380_v53 = vsel %vm747_vm14, %v375_v27, 0.0 }
  0xf8   : > { %v428_v58 = vrot.slane %v380_v53, 6 }
  0xfe   : > { %v393_v51 = vpop.permute.xlu2 %392 }
  0xff   : > { %v398_v57 = vsel %vm397_vm2, %v393_v51, 0.0 }
 0x100   : > { %v434_v63 = vrot.slane %v398_v57, 2 }
 0x104   : > { %v400_v23 = vpop.permute.xlu1 %399 }
 0x105   : > { %v405_v45 = vsel %vm740_vm12, %v400_v23, 0.0 }
 0x106   : > { %v407_v28 = vpop.permute.xlu0 %406 }
 0x107   : > { %v412_v31 = vsel %vm727_vm6, %v407_v28, 0.0 }
 0x108   : > { %v437_v37 = vrot.slane %v412_v31, 6 }
 0x10a   : > { %v451_v50 = vsel %vm445_vm13, %v405_v45, %v437_v37 }
 0x10c   : > { %v414_v42 = vpop.permute.xlu1 %413 }
 0x10d   : > { %v419_v44 = vsel %vm418_vm11, %v414_v42, 0.0 }
 0x10e   : > { %v440_v46 = vrot.slane %v419_v44, 4  ;;  %v384_v47 = vpop.permute.xlu0 %383 }
 0x10f   : > { %v389_v55 = vsel %vm388_vm1, %v384_v47, 0.0 }
 0x110   : > { %v452_v52 = vsel %vm447_vm15, %v451_v50, %v440_v46  ;;  %v431_v61 = vrot.slane %v389_v55, 4 }
 0x111   : > { %v453_v54 = vsel %vm449_vm0, %v452_v52, %v443_v49 }
 0x112   : > { %478 = vmatpush.msra.mxu1 %v453_v54 }
 0x114   : > { %v365_v59 = vpop.permute.xlu1 %364  ;;  %479 = vmatpush.msra.mxu1 %v702_v9 }
 0x115   : > { %v370_v62 = vsel %vm758_vm3, %v365_v59, 0.0 }
 0x116   : > { %v446_v0 = vsel %vm445_vm13, %v370_v62, %v428_v58  ;;  %v319_v1 = vpop.permute.xlu0 %318 }
 0x117   : > { %v357_v2 = vadd.f32 %v356_v60, %v319_v1  ;;  %v448_v3 = vsel %vm447_vm15, %v446_v0, %v431_v61 }
 0x118   : > { %v450_v5 = vsel %vm449_vm0, %v448_v3, %v434_v63 }
 0x119   : > { %480 = vmatpush.msra.mxu1 %v450_v5  ;;  %v363_v6 = vmax.f32 %v357_v2, 0.0  ;;  %v510_v22 = vrot.slane %v357_v2, 4 }
 0x11a   : > { %585 = vmatmul.msk.f32.vlgmr.msra.gmra.mxu1 %vm461_vm4, %v454_v4 }
 0x11b   : > { %488 = vrot.lane.b32.xlu2 %v363_v6, %s626_s29  ;;  %485 = vrot.lane.b32.xlu1 %v363_v6, %s620_s19  ;;  %s588_s19 = sshll.u32 %s812_s28, 4 }
 0x11c   : > { %s302_s24 = scalar_lea.vmem %s800_s8, %s588_s19 }
 0x11e   : > { %v324_v9 = vpop.permute.xlu0 %323 }
 0x11f   : > { %v360_v15 = vadd.f32 %v359_v12, %v324_v9 }
 0x121   : > { %v511_v18 = vrot.slane %v360_v15, 4 }
 0x123   : > { %496 = vperm.xlu1 %609, %v493_v7   ;;  %503 = vperm.xlu2 %610, %v500_v8   ;;  %v512_v27 = vsel %vm447_vm15, %v510_v22, %v511_v18 }
 0x126   : > { %v459_v23 = vpop.permute.xlu0 %458 }
 0x175   : > { %v489_v10 = vpop.permute.xlu2 %488 }
 0x176   : > { %v490_v16 = vsel %vm758_vm3, %v489_v10, -inf }
 0x17d   : > { %v504_v20 = vpop.permute.xlu2 %503 }
 0x18d   : > { %v486_v11 = vpop.permute.xlu1 %485 }
 0x18e   : > { %v487_v13 = vsel %vm740_vm12, %v486_v11, -inf }
 0x18f   : > { %v491_v14 = vmax.f32 %v363_v6, %v487_v13 }
 0x191   : > { %v492_v17 = vmax.f32 %v491_v14, %v490_v16 }
 0x195   : > { %v497_v19 = vpop.permute.xlu1 %496 }
 0x196   : > { %v499_v21 = vmul.f32 %v497_v19, %v492_v17 }
 0x197   : > { %v482_v24 = vpop.f32.mrf.mxu1 }
 0x198   : > { %v483_v25 = vadd.f32 %v482_v24, %v459_v23  ;;  %v506_v26 = vadd.f32 %v504_v20, %v499_v21 }
 0x19a   : > { %v515_v28 = vadd.f32 %v512_v27, %v483_v25  ;;  %v507_v29 = vsel %vm445_vm13, %v506_v26, %v357_v2 }
 0x19b   : > { %v516_v30 = vadd.f32 %v511_v18, %v507_v29 }
 0x19c   : > { %517 = vst [vmem:[%s302_s24] sm:$0xff] %v515_v28 }
 0x19d   : > { %518 = vst [vmem:[%s302_s24 + $0x8] sm:$0xf] %v516_v30 }
 0x19e PF: > { %s18_s27 = sadd.s32 1, %s617_s27  }
 0x19f   : > { %p15_p4 = scmp.ge.s32.totalorder %s18_s27, 4  }
 0x1a1   :  { %17 = sbr.rel (!%p15_p4) target bundleno = 1 (0x1), region = 82 }

</bundles_post_ra>
